<compile_context>
chip_gen: v7x
topology: tpu7x:2x2x1
jax: 0.10.0
libtpu: 0.0.40
codegen_flags: <defaults>
</compile_context>

<pallas_src>
import functools

import jax
import jax.numpy as jnp
from jax.experimental import pallas as pl
from jax.experimental.pallas import tpu as pltpu

# TODO(synk): the real vvenc encode/decode subprocess (codec_ops.codec_fn) is
# an external CPU binary and cannot be expressed in Pallas; a quantization
# surrogate with matching shapes/dtypes is implemented instead.

_LANE = 128
_TILE_R_MAX = 4096          # 4096 * 128 * 4 B = 2 MiB per f32 tile


def _round_up(a, m):
    return ((a + m - 1) // m) * m


def _codec_kernel(step_ref, inv_step_ref, x_ref, xhat_ref, bpp_ref, acc_ref,
                  *, inv_norm, tile_r):
    """Grid = (batch, pixel_tiles).  One lane-dense pixel tile per step.

    step_ref / inv_step_ref : SMEM (B,) float32  hoisted per-image Qstep, 1/Qstep
    x_ref     : VMEM (1, tile_r, 128)  input pixel tile
    xhat_ref  : VMEM (1, tile_r, 128)  reconstructed pixel tile
    bpp_ref   : VMEM (1, 1, 128)       per-image bpp (written at last tile only)
    acc_ref   : VMEM (8, 128) scratch  partial bit-count accumulator
    """
    b = pl.program_id(0)
    t = pl.program_id(1)
    n_t = pl.num_programs(1)

    step = step_ref[b]
    inv_step = inv_step_ref[b]

    @pl.when(t == 0)
    def _init():
        acc_ref[...] = jnp.zeros_like(acc_ref)

    x = x_ref[...]                                   # (1, tile_r, 128) f32
    q = jnp.round(x * inv_step)                      # quantized coefficients
    xhat_ref[...] = (q * step).astype(xhat_ref.dtype)

    # Surrogate rate: log2(1 + |q|) bits per coefficient.  Reduce only across
    # whole vregs (pure VALU adds) each step; defer the cross-lane/sublane
    # collapse to the final tile.
    rate = jnp.log2(1.0 + jnp.abs(q))                # (1, tile_r, 128)
    partial = jnp.sum(rate.reshape(tile_r // 8, 8, _LANE), axis=0)  # (8, 128)
    acc_ref[...] += partial

    @pl.when(t == n_t - 1)
    def _finalize():
        bits = jnp.sum(acc_ref[...])                 # single full reduce (XLU)
        bpp = bits * jnp.float32(inv_norm)
        bpp_ref[...] = jnp.full(bpp_ref.shape, bpp, dtype=jnp.float32)


def standard_codec_forward(x, qp, ds=1):
    """Pallas replacement for StandardCodec.forward.

    Args:
      x  : float32 [B, C, H, W]  (NCHW, same as the PyTorch module)
      qp : float32 [B]           per-image quality parameter
      ds : python int/float      downsample factor (static)
    Returns:
      (x_hat [B, C, H, W] float32, bpp [B] float32)
    """
    B, C, H, W = x.shape
    x = x.astype(jnp.float32)
    qp = qp.astype(jnp.float32)

    # ---- lane-dense pixel layout: (B, R, 128), R a multiple of the tile ----
    n = C * H * W
    r_raw = -(-n // _LANE)
    if r_raw <= _TILE_R_MAX:
        tile_r = _round_up(r_raw, 8)
        r_pad = tile_r
    else:
        tile_r = _TILE_R_MAX
        r_pad = _round_up(r_raw, tile_r)
    n_tiles = r_pad // tile_r
    n_pad = r_pad * _LANE

    x_flat = x.reshape(B, n)
    if n_pad != n:
        # zero padding: round(0)=0 and log2(1+0)=0, so it never affects results
        x_flat = jnp.pad(x_flat, ((0, 0), (0, n_pad - n)))
    x3 = x_flat.reshape(B, r_pad, _LANE)

    # ---- hoisted per-image scalars: HEVC/VVC-style Qstep = 2^((qp-4)/6) ----
    e = (qp - 4.0) / 6.0
    step = jnp.exp2(e).astype(jnp.float32)
    inv_step = jnp.exp2(-e).astype(jnp.float32)

    inv_norm = 1.0 / (float(H * W) * float(ds) * float(ds))

    kernel = functools.partial(_codec_kernel, inv_norm=inv_norm, tile_r=tile_r)

    x_hat3, bpp_pad = pl.pallas_call(
        kernel,
        grid=(B, n_tiles),
        in_specs=[
            pl.BlockSpec(memory_space=pltpu.MemorySpace.SMEM),      # step (B,)
            pl.BlockSpec(memory_space=pltpu.MemorySpace.SMEM),      # inv_step
            pl.BlockSpec((1, tile_r, _LANE), lambda b, t: (b, t, 0)),  # x
        ],
        out_specs=[
            pl.BlockSpec((1, tile_r, _LANE), lambda b, t: (b, t, 0)),  # x_hat
            pl.BlockSpec((1, 1, _LANE), lambda b, t: (b, 0, 0)),       # bpp row
        ],
        out_shape=[
            jax.ShapeDtypeStruct((B, r_pad, _LANE), jnp.float32),
            jax.ShapeDtypeStruct((B, 1, _LANE), jnp.float32),
        ],
        scratch_shapes=[pltpu.VMEM((8, _LANE), jnp.float32)],
        compiler_params=pltpu.CompilerParams(
            dimension_semantics=("parallel", "arbitrary"),
            vmem_limit_bytes=32 * 1024 * 1024),
    )(step, inv_step, x3)

    x_hat = x_hat3.reshape(B, n_pad)[:, :n].reshape(B, C, H, W)
    bpp = bpp_pad[:, 0, 0]                                          # (B,)

    # GradientConnector.forward: (input1, input2) -> pass-through; the module
    # keeps only x_hat, so no additional compute is required here.
    return x_hat, bpp


def _reference(x, qp, ds=1):
    """Pure-JAX reference of the surrogate for a correctness check."""
    B, C, H, W = x.shape
    e = (qp.astype(jnp.float32) - 4.0) / 6.0
    step = jnp.exp2(e)[:, None, None, None]
    inv_step = jnp.exp2(-e)[:, None, None, None]
    q = jnp.round(x.astype(jnp.float32) * inv_step)
    x_hat = q * step
    bits = jnp.sum(jnp.log2(1.0 + jnp.abs(q)), axis=(1, 2, 3))
    bpp = bits / (float(H * W) * float(ds) * float(ds))
    return x_hat, bpp


if __name__ == "__main__":
    key = jax.random.PRNGKey(0)
    k_x, k_qp = jax.random.split(key)

    B, C, H, W = 2, 4, 16, 16
    x = jax.random.normal(k_x, (B, C, H, W), dtype=jnp.float32)
    qp = jax.random.uniform(k_qp, (B,), minval=22.0, maxval=37.0,
                            dtype=jnp.float32)

    x_hat, bpp = standard_codec_forward(x, qp, ds=1)
    jax.block_until_ready((x_hat, bpp))

    assert x_hat.shape == (B, C, H, W) and x_hat.dtype == jnp.float32
    assert bpp.shape == (B,) and bpp.dtype == jnp.float32

    x_hat_ref, bpp_ref = _reference(x, qp, ds=1)
    assert jnp.allclose(x_hat, x_hat_ref, rtol=1e-5, atol=1e-5)
    assert jnp.allclose(bpp, bpp_ref, rtol=1e-4, atol=1e-5)

    print("KERNEL_OK")
</pallas_src>

<mosaic_0001>
module attributes {stable_mosaic.version = 11 : i64} {
  func.func @_codec_kernel(%arg0: i32, %arg1: i32, %arg2: memref<2xf32, #tpu.memory_space<smem>>, %arg3: memref<2xf32, #tpu.memory_space<smem>>, %arg4: memref<1x8x128xf32, #tpu.memory_space<vmem>>, %arg5: memref<1x8x128xf32, #tpu.memory_space<vmem>>, %arg6: memref<1x1x128xf32, #tpu.memory_space<vmem>>, %arg7: memref<8x128xf32, #tpu.memory_space<vmem>>) attributes {dimension_semantics = [#tpu.dimension_semantics<parallel>, #tpu.dimension_semantics<arbitrary>], iteration_bounds = array<i64: 2, 1>, scalar_prefetch = 0 : i64, scratch_operands = 1 : i64, tpu.core_type = #tpu.core_type<tc>, window_params = [{transform_indices = @transform_0, window_bounds = array<i64: 2>}, {transform_indices = @transform_1, window_bounds = array<i64: 2>}, {transform_indices = @transform_2, window_bounds = array<i64: 1, 8, 128>}, {transform_indices = @transform_3, window_bounds = array<i64: 1, 8, 128>}, {transform_indices = @transform_4, window_bounds = array<i64: 1, 1, 128>}]} {
    %0 = arith.index_cast %arg0 : i32 to index
    %1 = memref.load %arg2[%0] : memref<2xf32, #tpu.memory_space<smem>>
    %2 = arith.index_cast %arg0 : i32 to index
    %3 = memref.load %arg3[%2] : memref<2xf32, #tpu.memory_space<smem>>
    %c0_i32 = arith.constant 0 : i32
    %4 = arith.cmpi eq, %arg1, %c0_i32 : i32
    %5 = arith.extui %4 : i1 to i32
    %c0_i32_0 = arith.constant 0 : i32
    %6 = arith.cmpi ne, %5, %c0_i32_0 : i32
    scf.if %6 {
      %cst_14 = arith.constant 0.000000e+00 : f32
      %28 = vector.broadcast %cst_14 : f32 to vector<8x128xf32>
      %c0_15 = arith.constant 0 : index
      %c0_16 = arith.constant 0 : index
      %29 = vector.load %arg7[%c0_15, %c0_16] : memref<8x128xf32, #tpu.memory_space<vmem>>, vector<8x128xf32>
      tpu.vector_store %arg7[%c0_15, %c0_16], %28 {strides = array<i32>} : memref<8x128xf32, #tpu.memory_space<vmem>>, vector<8x128xf32>,
    } else {
    }
    %c0 = arith.constant 0 : index
    %c0_1 = arith.constant 0 : index
    %c0_2 = arith.constant 0 : index
    %7 = vector.load %arg4[%c0, %c0_1, %c0_2] : memref<1x8x128xf32, #tpu.memory_space<vmem>>, vector<1x8x128xf32>
    %8 = vector.broadcast %3 : f32 to vector<1x8x128xf32>
    %9 = arith.mulf %7, %8 : vector<1x8x128xf32>
    %10 = math.roundeven %9 : vector<1x8x128xf32>
    %11 = vector.broadcast %1 : f32 to vector<1x8x128xf32>
    %12 = arith.mulf %10, %11 : vector<1x8x128xf32>
    %c0_3 = arith.constant 0 : index
    %c0_4 = arith.constant 0 : index
    %c0_5 = arith.constant 0 : index
    %13 = vector.load %arg5[%c0_3, %c0_4, %c0_5] : memref<1x8x128xf32, #tpu.memory_space<vmem>>, vector<1x8x128xf32>
    tpu.vector_store %arg5[%c0_3, %c0_4, %c0_5], %12 {strides = array<i32>} : memref<1x8x128xf32, #tpu.memory_space<vmem>>, vector<1x8x128xf32>,
    %14 = math.absf %10 : vector<1x8x128xf32>
    %cst = arith.constant 1.000000e+00 : f32
    %15 = vector.broadcast %cst : f32 to vector<1x8x128xf32>
    %16 = arith.addf %15, %14 : vector<1x8x128xf32>
    %17 = math.log %16 : vector<1x8x128xf32>
    %cst_6 = arith.constant 2.000000e+00 : f32
    %18 = math.log %cst_6 : f32
    %19 = vector.broadcast %18 : f32 to vector<1x8x128xf32>
    %20 = arith.divf %17, %19 : vector<1x8x128xf32>
    %cst_7 = arith.constant dense<0.000000e+00> : vector<8x128xf32>
    %21 = vector.multi_reduction <add>, %20, %cst_7 [0] : vector<1x8x128xf32> to vector<8x128xf32>
    %c0_8 = arith.constant 0 : index
    %c0_9 = arith.constant 0 : index
    %22 = vector.load %arg7[%c0_8, %c0_9] : memref<8x128xf32, #tpu.memory_space<vmem>>, vector<8x128xf32>
    %23 = arith.addf %22, %21 : vector<8x128xf32>
    %c0_10 = arith.constant 0 : index
    %c0_11 = arith.constant 0 : index
    %24 = vector.load %arg7[%c0_10, %c0_11] : memref<8x128xf32, #tpu.memory_space<vmem>>, vector<8x128xf32>
    tpu.vector_store %arg7[%c0_10, %c0_11], %23 {strides = array<i32>} : memref<8x128xf32, #tpu.memory_space<vmem>>, vector<8x128xf32>,
    %c0_i32_12 = arith.constant 0 : i32
    %25 = arith.cmpi eq, %arg1, %c0_i32_12 : i32
    %26 = arith.extui %25 : i1 to i32
    %c0_i32_13 = arith.constant 0 : i32
    %27 = arith.cmpi ne, %26, %c0_i32_13 : i32
    scf.if %27 {
      %c0_14 = arith.constant 0 : index
      %c0_15 = arith.constant 0 : index
      %28 = vector.load %arg7[%c0_14, %c0_15] : memref<8x128xf32, #tpu.memory_space<vmem>>, vector<8x128xf32>
      %29 = vector.shape_cast %28 : vector<8x128xf32> to vector<1x8x128xf32>
      %cst_16 = arith.constant dense<0.000000e+00> : vector<1xf32>
      %30 = vector.multi_reduction <add>, %29, %cst_16 [1, 2] : vector<1x8x128xf32> to vector<1xf32>
      %31 = vector.shape_cast %30 : vector<1xf32> to vector<1x1x1xf32>
      %32 = vector.extract %31[0, 0, 0] : f32 from vector<1x1x1xf32>
      %cst_17 = arith.constant 3.906250e-03 : f32
      %33 = arith.mulf %32, %cst_17 : f32
      %34 = vector.broadcast %33 : f32 to vector<1x1x128xf32>
      %c0_18 = arith.constant 0 : index
      %c0_19 = arith.constant 0 : index
      %c0_20 = arith.constant 0 : index
      %35 = vector.load %arg6[%c0_18, %c0_19, %c0_20] : memref<1x1x128xf32, #tpu.memory_space<vmem>>, vector<1x1x128xf32>
      tpu.vector_store %arg6[%c0_18, %c0_19, %c0_20], %34 {strides = array<i32>} : memref<1x1x128xf32, #tpu.memory_space<vmem>>, vector<1x1x128xf32>,
    } else {
    }
    return
  }
  func.func @transform_0(%arg0: i32, %arg1: i32) -> i32 {
    %c0_i32 = arith.constant 0 : i32
    %c0_i32_0 = arith.constant 0 : i32
    return %c0_i32 : i32
  }
  func.func @transform_1(%arg0: i32, %arg1: i32) -> i32 {
    %c0_i32 = arith.constant 0 : i32
    %c0_i32_0 = arith.constant 0 : i32
    return %c0_i32 : i32
  }
  func.func @transform_2(%arg0: i32, %arg1: i32) -> (i32, i32, i32) {
    %c0_i32 = arith.constant 0 : i32
    %c0_i32_0 = arith.constant 0 : i32
    return %arg0, %arg1, %c0_i32 : i32, i32, i32
  }
  func.func @transform_3(%arg0: i32, %arg1: i32) -> (i32, i32, i32) {
    %c0_i32 = arith.constant 0 : i32
    %c0_i32_0 = arith.constant 0 : i32
    return %arg0, %arg1, %c0_i32 : i32, i32, i32
  }
  func.func @transform_4(%arg0: i32, %arg1: i32) -> (i32, i32, i32) {
    %c0_i32 = arith.constant 0 : i32
    %c0_i32_0 = arith.constant 0 : i32
    %c0_i32_1 = arith.constant 0 : i32
    return %arg0, %c0_i32, %c0_i32_0 : i32, i32, i32
  }
}

</mosaic_0001>

<bundles_post_ra>
// kernel: tpu_custom_call.1
= control target key start
LH: loop header
LB: loop body
LE: loop exit
PB: predicated region body
PF: predicated region fallthrough
CT: control target
= control target key end

     0   :  { %10 = vsyncpa [#allocation6], 0  ;;  %s1042_s0 = inlined_call_operand.hbm [shape: f32[2], index: 0, kind: input, shape index: {}]   ;;  %s1043_s1 = inlined_call_operand.vmem [shape: f32[2], index: 1, kind: input, shape index: {}]   ;;  %s1044_s2 = inlined_call_operand.hbm [shape: f32[2,8,128], index: 2, kind: input, shape index: {}]   ;;  %s1045_s3 = inlined_call_operand.hbm [shape: f32[2,8,128], index: 3, kind: output, shape index: {0}]   ;;  %s1046_s4 = inlined_call_operand.hbm [shape: f32[2,1,128], index: 4, kind: output, shape index: {1}]  }
   0x1   :  { %11 = vsyncpa [#allocation7], 0 }
   0x2   :  { %12 = vsyncpa [#allocation4], 0 }
   0x3   :  { %14 = vsyncpa [#allocation4 + $0x1], 0 }
   0x4   :  { %15 = vsyncpa [#allocation5], 0 }
   0x5   :  { %17 = vsyncpa [#allocation5 + $0x1], 0 }
   0x6   :  { %18 = vsyncpa [#allocation12], 0 }
   0x7   :  { %20 = vsyncpa [#allocation12 + $0x1], 0  ;;  %s792_s15 = smov 0   ;;  %s794_s16 = smov 0  }
   0x8   :  { %s796_s17 = smov 0   ;;  %s798_s18 = smov 0  }
   0x9   :  { %s800_s19 = smov 0   ;;  %s802_s20 = smov 0  }
   0xa LB: > { %s469_s21 = sadd.s32 4294967295, %s760_s20   ;;  %s470_s22 = sadd.s32 4294967294, %s760_s20   ;;  %s760_s20 = sphi %s802_s20, %s26_s20   ;;  %s756_s19 = sphi %s800_s19, %s1069_s19   ;;  %s752_s18 = sphi %s798_s18, %s1068_s18   ;;  %s748_s17 = sphi %s796_s17, %s1067_s17   ;;  %s744_s16 = sphi %s794_s16, %s1066_s16   ;;  %s740_s15 = sphi %s792_s15, %s1065_s15  }
   0xb   : > { %p102_p0 = scmp.ne.s32.totalorder %s744_s16, %s740_s15  ;;  %p826_p1 = scmp.eq.s32.totalorder %s469_s21, 0 }
   0xc   : > { %p830_p2 = scmp.eq.s32.totalorder %s469_s21, 1  ;;  %p134_p3 = scmp.eq.s32.totalorder %s470_s22, 1 }
   0xd   : > { %s1051_s23 = scalar_select %p826_p1, 1, 0 }
   0xe   : > { %p836_p4 = por %p826_p1, %p102_p0  ;;  %p471_p5 = scmp.ge.s32.totalorder %s760_s20, 1 }
   0xf   : > { %p841_p6 = por %p134_p3, %p102_p0  ;;  %p167_p7 = scmp.lt.s32.totalorder %s760_s20, 3 }
  0x10   : > { %s1053_s25 = scalar_select %p836_p4, 1, 0 }
  0x11   : > { %s1054_s26 = scalar_select %p841_p6, 1, 0 }
  0x12   : > { %p846_p8 = pnand %p471_p5, %p167_p7  ;;  %s189_s30 = sshll.u32 %s1043_s1, 4  ;;  %s190_s30 = int_to_ptr.vmem [resolvable:$true] %s189_s30 }
  0x13   : > { %s38_s6 = sadd.s32 1, %s756_s19  ;;  %s580_s10 = scalar_lea.hbm %s1042_s0, 16 }
  0x14   : > { %s1055_s27 = scalar_select %p846_p8, 1, 0 }
  0x15   : > { %p504_p10 = pneg %p846_p8  ;;  %p863_p12 = scmp.ge.s32.totalorder %s38_s6, 2 }
  0x16   : > { %p581_p13 = scmp.ne.s32.totalorder %s1042_s0, %s580_s10  ;;  %p587_p7 = scmp.lt.u32.totalorder %s580_s10, %s1042_s0 }
  0x17   : > { %p858_p11 = pnand %p504_p10, %p826_p1 }
  0x19   : > { %p582_p0 = pneg %p858_p11 }
  0x1b   : > { %p583_p3 = pnand %p582_p0, %p581_p13 }
  0x1d   : > { %p584_p5 = pneg %p583_p3 }
  0x1f   : > { %p589_p10 = pnand %p587_p7, %p584_p5 }
  0x21   : > { %592 = shalt.err (!%p589_p10)
}
  0x22   : > { %s762_s21 = smov [#allocation3]   ;;  %s593_s29 = scalar_lea.vmem %s190_s30, 16 }
  0x23   : > { %507 = dma.hbm_to_smem (!%p858_p11), %s1042_s0, 16, %s762_s21, [#allocation6]  }
  0x24   : > { %p594_p9 = scmp.ne.s32.totalorder %s190_s30, %s593_s29  ;;  %p601_p1 = scmp.lt.s32.totalorder %s190_s30, %s190_s30 }
  0x25   : > { %p602_p13 = scmp.lt.s32.totalorder %s593_s29, %s593_s29 }
  0x26   : > { %p596_p6 = pnand %p594_p9, %p582_p0 }
  0x27   : > { %p603_p3 = por %p602_p13, %p601_p1 }
  0x28   : > { %p597_p4 = pneg %p596_p6 }
  0x2a   : > { %p604_p8 = pnand %p603_p3, %p597_p4 }
  0x2c   : > { %607 = shalt.err (!%p604_p8)
}
  0x2d   : > { %s763_s8 = smov [#allocation8]   ;;  %s1071_s6 = smov (%p863_p12, %s38_s6), 0 }
  0x2e   : > { %510 = dma.vmem_to_smem (!%p858_p11), %s190_s30, 16, %s763_s8, [#allocation7]  }
  0x2f   : > { %s89_s9 = sadd.s32 1, %s748_s17  ;;  %p96_p1 = scmp.ne.s32.totalorder %s748_s17, %s744_s16 }
  0x30   : > { %s84_s10 = ssub.s32 %s756_s19, %s1071_s6  ;;  %p97_p4 = scmp.eq.s32.totalorder %s760_s20, 0 }
  0x31   : > { %p87_p6 = scmp.eq.s32.totalorder %s84_s10, 0  ;;  %p897_p8 = por %p830_p2, %p96_p1 }
  0x32   : > { %p98_p9 = por %p97_p4, %p96_p1  ;;  %p524_p0 = scmp.lt.s32.totalorder %s760_s20, 2 }
  0x33   : > { %s903_s11 = scalar_select %p87_p6, %s748_s17, %s89_s9  }
  0x34   : > { %s200_s12 = sand.u32 1, %s748_s17   ;;  %s476_s30 = sshll.u32 %s756_s19, 7 }
  0x35   : > { %s475_s7 = sshll.u32 %s200_s12, 3  ;;  %s910_s21 = scalar_lea.hbm %s1044_s2, %s476_s30 }
  0x36   : > { %s204_s24 = scalar_lea.vmem [#allocation9], %s475_s7  ;;  %p912_p2 = pnand %p524_p0, %p98_p9 }
  0x37   : > { %s212_s22 = sshll.u32 %s204_s24, 4  ;;  %s201_s29 = scalar_lea.sflag [#allocation4], %s200_s12  ;;  %s916_s22 = int_to_ptr.vmem [resolvable:$true] %s212_s22 }
  0x38   : > { %s608_s8 = scalar_lea.hbm %s910_s21, 128  ;;  %p610_p12 = pneg %p912_p2 }
  0x39   : > { %p609_p11 = scmp.ne.s32.totalorder %s910_s21, %s608_s8  ;;  %s613_s30 = scalar_lea.hbm %s1044_s2, 256 }
  0x3a   : > { %p614_p10 = scmp.lt.u32.totalorder %s910_s21, %s1044_s2  ;;  %p615_p13 = scmp.lt.u32.totalorder %s613_s30, %s608_s8 }
  0x3b   : > { %p611_p5 = pnand %p610_p12, %p609_p11  ;;  %p617_p1 = scmp.lt.u32.totalorder %s608_s8, %s910_s21 }
  0x3c   : > { %p616_p3 = por %p615_p13, %p614_p10 }
  0x3d   : > { %p612_p7 = pneg %p611_p5 }
  0x3e   : > { %p618_p4 = por %p617_p1, %p616_p3 }
  0x40   : > { %p619_p6 = pnand %p618_p4, %p612_p7 }
  0x42   : > { %622 = shalt.err (!%p619_p6)
}
  0x43   : > { %s623_s12 = scalar_lea.vmem %s916_s22, 128  ;;  %s764_s14 = smov [#allocation9]  }
  0x44   : > { %p624_p9 = scmp.ne.s32.totalorder %s916_s22, %s623_s12  ;;  %s628_s24 = sshll.u32 %s764_s14, 4  ;;  %s629_s24 = int_to_ptr.vmem [resolvable:$false] %s628_s24 }
  0x45   : > { %s630_s9 = scalar_lea.vmem %s629_s24, 256  ;;  %p631_p5 = scmp.lt.s32.totalorder %s916_s22, %s629_s24 }
  0x46   : > { %p626_p0 = pnand %p624_p9, %p610_p12  ;;  %p632_p10 = scmp.lt.s32.totalorder %s630_s9, %s623_s12 }
  0x48   : > { %p627_p11 = pneg %p626_p0  ;;  %p633_p13 = por %p632_p10, %p631_p5 }
  0x4a   : > { %p634_p3 = pnand %p633_p13, %p627_p11 }
  0x4c   : > { %637 = shalt.err (!%p634_p3)
}
  0x4d   : > { %514 = dma.hbm_to_vmem [thread:$0]  (!%p912_p2), %s910_s21, 128, %s916_s22, %s201_s29  }
  0x4e   : > { %p1060_p7 = scmp.ne.s32.totalorder %s1055_s27, 0 }
  0x4f   : > { %p1061_p12 = scmp.ne.s32.totalorder (!%p1060_p7), %s1051_s23, 0 }
  0x50   : > { %221 = sbr.rel (%p1060_p7) target bundleno = 347 (0x15b), region = 32 }
  0x57   : > { %719 = dma.done.wait (%p1061_p12), [#allocation6], 16  }
  0x58   : > { %721 = vsyncadd (%p1061_p12), [#allocation6], 4294967280 }
  0x59   : > { %723 = dma.done.wait (%p1061_p12), [#allocation7], 16  }
  0x5a   : > { %725 = vsyncadd (%p1061_p12), [#allocation7], 4294967280  ;;  %s954_s28 = sand.u32 1, %s744_s16   ;;  %p1062_p2 = scmp.ne.s32.totalorder %s1053_s25, 0 }
  0x5b   : > { %s480_s27 = sshll.u32 %s954_s28, 3  ;;  %s232_s21 = scalar_lea.sflag [#allocation4], %s954_s28 }
  0x5c   : > { %s235_s22 = scalar_lea.vmem [#allocation9], %s480_s27 }
  0x5d   : > { %727 = dma.done.wait (%p1062_p2), %s232_s21, 128  }
  0x5e   : > { %729 = vsyncadd (%p1062_p2), %s232_s21, 4294967168 }
  0x5f   : > { %240 = sfence }
  0x60   : > { %s266_s23 = sld [smem:[#allocation8 + %s752_s18]]  ;;  %v272_v0 = vld [vmem:[%s235_s22] sm:$0xff]  ;;  %s483_s29 = sshll.u32 %s752_s18, 7 }
  0x61   : > { %s265_s25 = sld [smem:[#allocation3 + %s752_s18]]  ;;  %s258_s8 = scalar_lea.vmem [#allocation10], %s480_s27 }
  0x62   : > { %s968_s7 = scalar_lea.hbm %s1045_s3, %s483_s29  ;;  %s324_s13 = sshll.u32 %s258_s8, 4  ;;  %s325_s13 = int_to_ptr.vmem [resolvable:$true] %s324_s13 }
  0x63   : > { %s306_s12 = scalar_lea.sflag [#allocation5], %s954_s28  ;;  %s638_s14 = scalar_lea.vmem %s325_s13, 128 }
  0x64   : > { %p639_p1 = scmp.ne.s32.totalorder %s325_s13, %s638_s14  ;;  %s765_s24 = smov [#allocation10]  }
  0x65   : > { %s642_s9 = sshll.u32 %s765_s24, 4  ;;  %s643_s9 = int_to_ptr.vmem [resolvable:$false] %s642_s9 }
  0x66   : > { %v273_v1 = vstv %s266_s23  ;;  %p640_p4 = pnand %p639_p1, %p897_p8  ;;  %s644_s21 = scalar_lea.vmem %s643_s9, 256 }
  0x67   : > { %v274_v2 = vmul.f32 %v273_v1, %v272_v0  ;;  %v276_v9 = vstv %s265_s25  ;;  %p645_p9 = scmp.lt.s32.totalorder %s325_s13, %s643_s9  ;;  %p646_p0 = scmp.lt.s32.totalorder %s644_s21, %s638_s14 }
  0x68   : > { %p641_p6 = pneg %p640_p4 }
  0x69   : > { %v487_v3 = vround.rtne.f32 %v274_v2  ;;  %p647_p11 = por %p646_p0, %p645_p9 }
  0x6b   : > { %v279_v4 = vand.u32 2147483647, %v487_v3  ;;  %v277_v10 = vmul.f32 %v487_v3, %v276_v9  ;;  %p648_p5 = pnand %p647_p11, %p641_p6 }
  0x6d   : > { %v280_v5 = vadd.f32 1.0, %v279_v4  ;;  %278 = vst [vmem:[%s258_s8] sm:$0xff] %v277_v10 }
  0x6f   : > { %578 = vlog2.f32 %v280_v5 }
  0x79   : > { %v579_v6 = vpop.eup %578 }
  0x7a   : > { %v282_v7 = vmul.f32 0.6931472, %v579_v6 }
  0x7c   : > { %v284_v8 = vmul.f32 1.442695, %v282_v7 }
  0x7e   : > { %293 = vadd.xlane.f32.xlu0 %v284_v8 }
  0x7f   : > { %651 = shalt.err (!%p648_p5)
}
  0x80   : > { %s652_s27 = scalar_lea.hbm %s968_s7, 128  ;;  %s656_s25 = scalar_lea.hbm %s1045_s3, 256 }
  0x81   : > { %p653_p10 = scmp.ne.s32.totalorder %s968_s7, %s652_s27  ;;  %p657_p7 = scmp.lt.u32.totalorder %s968_s7, %s1045_s3 }
  0x82   : > { %p658_p12 = scmp.lt.u32.totalorder %s656_s25, %s652_s27  ;;  %p660_p1 = scmp.lt.u32.totalorder %s652_s27, %s968_s7 }
  0x83   : > { %p654_p13 = pnand %p653_p10, %p897_p8 }
  0x84   : > { %p659_p2 = por %p658_p12, %p657_p7 }
  0x85   : > { %p655_p3 = pneg %p654_p13 }
  0x86   : > { %p661_p4 = por %p660_p1, %p659_p2 }
  0x88   : > { %p662_p6 = pnand %p661_p4, %p655_p3 }
  0x8a   : > { %665 = shalt.err (!%p662_p6)
}
  0x8b   : > { %500 = dma.vmem_to_hbm [thread:$0]  (%p897_p8), %s325_s13, 128, %s968_s7, %s306_s12  }
  0x8c   : > { %s264_s10 = scalar_lea.vmem [#allocation11], %s954_s28  ;;  %s484_s14 = sshll.u32 %s752_s18, 4 }
  0x8d   : > { %s337_s30 = sshll.u32 %s264_s10, 4  ;;  %s993_s22 = scalar_lea.hbm %s1046_s4, %s484_s14  ;;  %s995_s30 = int_to_ptr.vmem [resolvable:$true] %s337_s30 }
  0x8e   : > { %s311_s7 = scalar_lea.sflag [#allocation12], %s954_s28  ;;  %s666_s13 = scalar_lea.vmem %s995_s30, 16 }
  0x8f   : > { %p667_p9 = scmp.ne.s32.totalorder %s995_s30, %s666_s13  ;;  %s766_s18 = smov [#allocation11]  }
  0x90   : > { %s670_s12 = sshll.u32 %s766_s18, 4  ;;  %s671_s12 = int_to_ptr.vmem [resolvable:$false] %s670_s12 }
  0x91   : > { %p668_p0 = pnand %p667_p9, %p897_p8  ;;  %s672_s23 = scalar_lea.vmem %s671_s12, 32 }
  0x92   : > { %p673_p5 = scmp.lt.s32.totalorder %s995_s30, %s671_s12  ;;  %p674_p10 = scmp.lt.s32.totalorder %s672_s23, %s666_s13 }
  0x93   : > { %p669_p11 = pneg %p668_p0 }
  0x94   : > { %p675_p13 = por %p674_p10, %p673_p5 }
  0x96   : > { %p676_p3 = pnand %p675_p13, %p669_p11 }
 0x10b   : > { %v294_v11 = vpop.xlane.xlu0 %293 }
 0x10c   : > { %v295_v12 = vrot.slane %v294_v11, 4 }
 0x10e   : > { %v296_v13 = vadd.f32 %v295_v12, %v294_v11 }
 0x110   : > { %v297_v14 = vrot.slane %v296_v13, 2 }
 0x112   : > { %v298_v15 = vadd.f32 %v297_v14, %v296_v13 }
 0x114   : > { %v299_v16 = vrot.slane %v298_v15, 1 }
 0x116   : > { %v300_v17 = vadd.f32 %v299_v16, %v298_v15 }
 0x118   : > { %488 = vpush %v300_v17 }
 0x149   : > { %s489_s24 = spop %488 }
 0x14a   : > { %s302_s9 = smul.f32 0.00390625, %s489_s24 }
 0x14c   : > { %v303_v18 = vstv %s302_s9 }
 0x14d   : > { %304 = vst [vmem:[%s264_s10] sm:$0x1] %v303_v18 }
 0x14e   : > { %679 = shalt.err (!%p676_p3)
}
 0x14f   : > { %s680_s28 = scalar_lea.hbm %s993_s22, 16  ;;  %s684_s8 = scalar_lea.hbm %s1046_s4, 32 }
 0x150   : > { %p681_p7 = scmp.ne.s32.totalorder %s993_s22, %s680_s28  ;;  %p685_p1 = scmp.lt.u32.totalorder %s993_s22, %s1046_s4 }
 0x151   : > { %p686_p4 = scmp.lt.u32.totalorder %s684_s8, %s680_s28  ;;  %p688_p9 = scmp.lt.u32.totalorder %s680_s28, %s993_s22 }
 0x152   : > { %p682_p12 = pnand %p681_p7, %p897_p8 }
 0x153   : > { %p687_p6 = por %p686_p4, %p685_p1 }
 0x154   : > { %p683_p2 = pneg %p682_p12 }
 0x155   : > { %p689_p0 = por %p688_p9, %p687_p6 }
 0x157   : > { %p690_p11 = pnand %p689_p0, %p683_p2 }
 0x159   : > { %693 = shalt.err (!%p690_p11)
}
 0x15a   : > { %501 = dma.vmem_to_hbm [thread:$0]  (%p897_p8), %s995_s30, 16, %s993_s22, %s311_s7  }
 0x15b PF: > { %s349_s24 = sand.u32 1, %s740_s15   ;;  %p1063_p5 = scmp.ne.s32.totalorder %s1054_s26, 0 }
 0x15c   : > { %p1064_p10 = scmp.ge.s32.totalorder %s760_s20, 2  ;;  %s350_s9 = scalar_lea.sflag [#allocation5], %s349_s24 }
 0x15e   : > { %p516_p13 = pnand %p1064_p10, %p1063_p5 }
 0x160   : > { %731 = dma.done.wait (!%p516_p13), %s350_s9, 128  }
 0x161   : > { %733 = vsyncadd (!%p516_p13), %s350_s9, 4294967168  ;;  %s359_s21 = scalar_lea.sflag [#allocation12], %s349_s24 }
 0x162   : > { %735 = dma.done.wait (!%p516_p13), %s359_s21, 16  }
 0x163   : > { %737 = vsyncadd (!%p516_p13), %s359_s21, 4294967280  ;;  %s26_s20 = sadd.s32 1, %s760_s20   ;;  %s1065_s15 = smov %s744_s16 }
 0x164   : > { %p23_p3 = scmp.ge.s32.totalorder %s26_s20, 4   ;;  %s1066_s16 = smov %s748_s17 }
 0x165   : > { %s1067_s17 = smov %s903_s11  ;;  %s1068_s18 = smov %s756_s19 }
 0x166   : > { %s1069_s19 = smov %s1071_s6  ;;  %25 = sbr.rel (!%p23_p3) target bundleno = 10 (0xa), region = 112 }
 0x16d   :  { %363 = vsyncpa [#allocation4], 1 }
 0x16e   :  { %365 = vsyncpa [#allocation4 + $0x1], 1 }
 0x16f   :  { %366 = vsyncpa [#allocation5], 1 }
 0x170   :  { %368 = vsyncpa [#allocation5 + $0x1], 1 }
 0x171   :  { %369 = vsyncpa [#allocation12], 1 }
 0x172   :  { %371 = vsyncpa [#allocation12 + $0x1], 1 }
 0x173   :  { %372 = vsyncpa [#allocation6], 1 }
 0x174   :  { %374 = vsyncpa [#allocation6 + $0x1], 1 }
 0x175   :  { %375 = vsyncpa [#allocation7], 1 }
 0x176   :  { %377 = vsyncpa [#allocation7 + $0x1], 1 }

</bundles_post_ra>
